<compile_context>
chip_gen: v5e
topology: v5e:2x2
jax: 0.10.0
libtpu: 0.0.40
codegen_flags: <defaults>
</compile_context>

<pallas_src>
import jax
import jax.numpy as jnp
from jax.experimental import pallas as pl
from jax.experimental.pallas import tpu as pltpu


_TARGET_TILE_BYTES = 4 * 1024 * 1024    # ~4 MiB per x/out tile
_VMEM_LIMIT_BYTES = 32 * 1024 * 1024    # explicit: safe on v5e/v6e/v7x


def _pad_to(v, m):
    return ((v + m - 1) // m) * m


def _norm_rowwise_kernel(x_ref, aux_ref, o_ref):
    # x_ref: (br, bc) tile; aux_ref: (br, 2) per-row [scale, bias] in f32.
    x = x_ref[...].astype(jnp.float32)
    scale = aux_ref[:, 0:1]             # (br, 1) -> broadcast over lanes
    bias = aux_ref[:, 1:2]
    o_ref[...] = (x * scale + bias).astype(o_ref.dtype)


def _norm_colwise_kernel(x_ref, aux_ref, o_ref):
    # x_ref: (br, bc) tile; aux_ref: (2, bc) per-lane [scale; bias] in f32,
    # broadcast along sublanes (the cheap direction).
    x = x_ref[...].astype(jnp.float32)
    scale = aux_ref[0:1, :]             # (1, bc)
    bias = aux_ref[1:2, :]
    o_ref[...] = (x * scale + bias).astype(o_ref.dtype)


def _choose_blocks(rows, cols, itemsize):
    """Pick an (8,128)-aligned block; prefer full-width lane blocks."""
    cols_128 = _pad_to(cols, 128)
    # Widest lane block such that 8 rows of it still fit the tile budget.
    max_bc = max(128, (_TARGET_TILE_BYTES // (8 * itemsize)) // 128 * 128)
    bc = min(cols_128, max_bc)
    if rows < 8:
        br = rows                        # block dim == full array dim: allowed
    else:
        br = max(8, min(_pad_to(rows, 8),
                        (_TARGET_TILE_BYTES // (bc * itemsize)) // 8 * 8))
    return br, bc


def normalization_forward(x, mean, std):
    """(x - mean) / std with PyTorch NCHW per-channel broadcasting.

    x:    (N, C, H, W)
    mean: (C,) or (C, 1, 1)
    std:  (C,) or (C, 1, 1)
    """
    N, C, H, W = x.shape
    dtype = x.dtype
    itemsize = jnp.dtype(dtype).itemsize

    mean = jnp.reshape(mean, (C,)).astype(jnp.float32)
    std = jnp.reshape(std, (C,)).astype(jnp.float32)
    # Fold normalization into one FMA: out = x * scale + bias.
    # TODO(synk): no guard for std == 0 (inf/NaN), same as the PyTorch module.
    scale = 1.0 / std
    bias = -mean * scale

    hw = H * W
    rowwise = (hw % 128 == 0)

    if rowwise:
        # (N*C, H*W): every row is lane-dense; per-row scale/bias.
        rows, cols = N * C, hw
        x2d = x.reshape(rows, cols)
        aux = jnp.stack([jnp.tile(scale, (N,)), jnp.tile(bias, (N,))], axis=1)
        kernel = _norm_rowwise_kernel
    else:
        # Small / non-128-multiple feature maps: flatten each sample so the
        # lane dim is C*H*W; scale/bias become per-lane row vectors.
        rows, cols = N, C * hw
        x2d = x.reshape(rows, cols)
        aux = jnp.stack([jnp.repeat(scale, hw), jnp.repeat(bias, hw)], axis=0)
        kernel = _norm_colwise_kernel

    br, bc = _choose_blocks(rows, cols, itemsize)
    grid = (pl.cdiv(rows, br), pl.cdiv(cols, bc))   # col axis = fastest dim

    if rowwise:
        aux_spec = pl.BlockSpec((br, 2), lambda i, j: (i, 0))
    else:
        aux_spec = pl.BlockSpec((2, bc), lambda i, j: (0, j))

    cost = pl.CostEstimate(
        flops=2 * rows * cols,
        transcendentals=0,
        bytes_accessed=2 * rows * cols * itemsize + aux.size * 4,
    )

    out2d = pl.pallas_call(
        kernel,
        out_shape=jax.ShapeDtypeStruct((rows, cols), dtype),
        grid_spec=pl.GridSpec(
            grid=grid,
            in_specs=[
                pl.BlockSpec((br, bc), lambda i, j: (i, j)),
                aux_spec,
            ],
            out_specs=pl.BlockSpec((br, bc), lambda i, j: (i, j)),
        ),
        compiler_params=pltpu.CompilerParams(
            dimension_semantics=("parallel", "parallel"),
            vmem_limit_bytes=_VMEM_LIMIT_BYTES,
        ),
        cost_estimate=cost,
    )(x2d, aux)

    return out2d.reshape(N, C, H, W)


if __name__ == "__main__":
    key = jax.random.PRNGKey(0)
    kx, km, ks, kx2 = jax.random.split(key, 4)

    # Main case: H*W multiple of 128 -> lane-dense per-row path.
    N, C, H, W = 2, 4, 16, 16
    x = jax.random.normal(kx, (N, C, H, W), dtype=jnp.float32)
    mean = jax.random.uniform(km, (C, 1, 1), dtype=jnp.float32,
                              minval=-0.5, maxval=0.5)
    std = jax.random.uniform(ks, (C, 1, 1), dtype=jnp.float32,
                             minval=0.5, maxval=1.5)

    out = jax.block_until_ready(normalization_forward(x, mean, std))
    ref = (x - mean[None]) / std[None]
    assert out.shape == x.shape
    assert jnp.allclose(out, ref, atol=1e-5, rtol=1e-5)

    # Secondary case: 7x7 feature map (non-128-multiple) -> flattened path
    # with masked boundary blocks.
    x2 = jax.random.normal(kx2, (2, 4, 7, 7), dtype=jnp.float32)
    out2 = jax.block_until_ready(normalization_forward(x2, mean, std))
    ref2 = (x2 - mean[None]) / std[None]
    assert out2.shape == x2.shape
    assert jnp.allclose(out2, ref2, atol=1e-5, rtol=1e-5)

    print("KERNEL_OK")
</pallas_src>

<mosaic_0001>
module attributes {stable_mosaic.version = 11 : i64} {
  func.func @_norm_rowwise_kernel(%arg0: i32, %arg1: i32, %arg2: memref<8x256xf32, #tpu.memory_space<vmem>>, %arg3: memref<8x2xf32, #tpu.memory_space<vmem>>, %arg4: memref<8x256xf32, #tpu.memory_space<vmem>>) attributes {dimension_semantics = [#tpu.dimension_semantics<parallel>, #tpu.dimension_semantics<parallel>], iteration_bounds = array<i64: 1, 1>, scalar_prefetch = 0 : i64, scratch_operands = 0 : i64, tpu.core_type = #tpu.core_type<tc>, window_params = [{transform_indices = @transform_0, window_bounds = array<i64: 8, 256>}, {transform_indices = @transform_1, window_bounds = array<i64: 8, 2>}, {transform_indices = @transform_2, window_bounds = array<i64: 8, 256>}]} {
    %c0 = arith.constant 0 : index
    %c0_0 = arith.constant 0 : index
    %0 = vector.load %arg2[%c0, %c0_0] : memref<8x256xf32, #tpu.memory_space<vmem>>, vector<8x256xf32>
    %c0_1 = arith.constant 0 : index
    %c0_2 = arith.constant 0 : index
    %1 = vector.load %arg3[%c0_1, %c0_2] : memref<8x2xf32, #tpu.memory_space<vmem>>, vector<8x1xf32>
    %c0_3 = arith.constant 0 : index
    %c1 = arith.constant 1 : index
    %2 = vector.load %arg3[%c0_3, %c1] : memref<8x2xf32, #tpu.memory_space<vmem>>, vector<8x1xf32>
    %3 = vector.broadcast %1 : vector<8x1xf32> to vector<8x256xf32>
    %4 = arith.mulf %0, %3 : vector<8x256xf32>
    %5 = vector.broadcast %2 : vector<8x1xf32> to vector<8x256xf32>
    %6 = arith.addf %4, %5 : vector<8x256xf32>
    %c0_4 = arith.constant 0 : index
    %c0_5 = arith.constant 0 : index
    %7 = vector.load %arg4[%c0_4, %c0_5] : memref<8x256xf32, #tpu.memory_space<vmem>>, vector<8x256xf32>
    tpu.vector_store %arg4[%c0_4, %c0_5], %6 {strides = array<i32>} : memref<8x256xf32, #tpu.memory_space<vmem>>, vector<8x256xf32>,
    return
  }
  func.func @transform_0(%arg0: i32, %arg1: i32) -> (i32, i32) {
    %c0_i32 = arith.constant 0 : i32
    return %arg0, %arg1 : i32, i32
  }
  func.func @transform_1(%arg0: i32, %arg1: i32) -> (i32, i32) {
    %c0_i32 = arith.constant 0 : i32
    %c0_i32_0 = arith.constant 0 : i32
    return %arg0, %c0_i32 : i32, i32
  }
  func.func @transform_2(%arg0: i32, %arg1: i32) -> (i32, i32) {
    %c0_i32 = arith.constant 0 : i32
    return %arg0, %arg1 : i32, i32
  }
}

</mosaic_0001>

<bundles_post_ra>
// kernel: tpu_custom_call.1
= control target key start
LH: loop header
LB: loop body
LE: loop exit
PB: predicated region body
PF: predicated region fallthrough
CT: control target
= control target key end

     0   :  { %7 = vsyncpa [#allocation3], 0  ;;  %s147_s0 = inlined_call_operand.hbm [shape: f32[8,256], index: 0, kind: input, shape index: {}]   ;;  %s148_s1 = inlined_call_operand.vmem [shape: f32[8,2], index: 1, kind: input, shape index: {}]   ;;  %s149_s2 = inlined_call_operand.hbm [shape: f32[8,256], index: 2, kind: output, shape index: {}]  }
   0x1   :  { %8 = vsyncpa [#allocation4], 0  ;;  %s14_s11 = sshll.u32 %s147_s0, 4  ;;  %s119_s12 = smov [#allocation2]   ;;  %s15_s11 = int_to_ptr.hbm [resolvable:$true] %s14_s11 }
   0x2   :  { %s16_s13 = sshll.u32 %s119_s12, 4  ;;  %s17_s13 = int_to_ptr.vmem [resolvable:$true] %s16_s13 }
   0x3   :  { %19 = dma.hbm_to_vmem [thread:$0]  %s15_s11, 256, %s17_s13, [#allocation3]  }
   0x4   :  { %115 = dma.done.wait [#allocation3], 256  }
   0x5   :  { %116 = vsyncadd [#allocation3], 4294967040  ;;  %v120_v0 = vmov 0   ;;  %v28_v1 = vld [vmem:[%s148_s1] sm:$0xff]  ;;  %v121_v2 = vmov 1   ;;  %v27_v5 = vld [vmem:[#allocation2 + $0x8] sm:$0xff] }
   0x6   :  { %65 = vset.pattern.permute.xlu0 %v120_v0  ;;  %v26_v4 = vld [vmem:[#allocation2] sm:$0xff]  ;;  %s122_s0 = smov [#allocation5]   ;;  %s51_s19 = sshll.u32 %s149_s2, 4  ;;  %s52_s19 = int_to_ptr.hbm [resolvable:$true] %s51_s19 }
   0x7   :  { %31 = vperm.xlu0 %65, %v28_v1   ;;  %s49_s16 = sshll.u32 %s122_s0, 4  ;;  %s50_s16 = int_to_ptr.vmem [resolvable:$true] %s49_s16 }
   0xf   :  { %66 = vset.pattern.permute.xlu0 %v121_v2 }
  0x10   :  { %37 = vperm.xlu0 %66, %v28_v1  }
  0x79   :  { %v32_v3 = vpop.permute.xlu0 %31 }
  0x7a   :  { %v34_v6 = vmul.f32 %v32_v3, %v26_v4  ;;  %v35_v7 = vmul.f32 %v32_v3, %v27_v5 }
  0x82   :  { %v38_v8 = vpop.permute.xlu0 %37 }
  0x83   :  { %v40_v9 = vadd.f32 %v38_v8, %v34_v6  ;;  %v41_v10 = vadd.f32 %v38_v8, %v35_v7 }
  0x85   :  { %42 = vst [vmem:[#allocation5] sm:$0xff] %v40_v9 }
  0x86   :  { %43 = vst [vmem:[#allocation5 + $0x8] sm:$0xff] %v41_v10 }
  0x87   :  { %54 = dma.vmem_to_hbm [thread:$0]  %s50_s16, 256, %s52_s19, [#allocation4]  }
  0x88   :  { %117 = dma.done.wait [#allocation4], 256  }
  0x89   :  { %118 = vsyncadd [#allocation4], 4294967040 }
  0x8a   :  { %59 = vsyncpa [#allocation3], 1 }
  0x8b   :  { %60 = vsyncpa [#allocation4], 1 }

</bundles_post_ra>
